<compile_context>
chip_gen: v7x
topology: tpu7x:2x2x1
jax: 0.10.0
libtpu: 0.0.40
codegen_flags: <defaults>
</compile_context>

<pallas_src>
import math

import jax
import jax.numpy as jnp
from jax.experimental import pallas as pl
from jax.experimental.pallas import tpu as pltpu

# small shapes consistent with the module (hidden = num_units)
NUM_UNITS = 32
NUM_LAYERS = 4
BATCH = 2
SEQ = 16                       # input is (BATCH, SEQ, NUM_UNITS)


# ----------------------------- fused highway kernel -------------------------
def _highway_kernel_factory(num_layers):
    def kernel(x_ref, wh_ref, bh_ref, wt_ref, bt_ref, o_ref):
        # x_ref : (TM, D)    bf16   row tile of the flattened input
        # wh_ref: (L, D, D)  bf16   linear ("h") weights, already transposed
        # bh_ref: (L, 1, D)  f32
        # wt_ref: (L, D, D)  bf16   gate ("t") weights, already transposed
        # bt_ref: (L, 1, D)  f32
        # o_ref : (TM, D)    f32
        x = x_ref[...].astype(jnp.float32)
        for l in range(num_layers):            # static unroll: serial layers
            xb = x.astype(jnp.bfloat16)        # bf16 operand for the MXU
            zh = jnp.dot(xb, wh_ref[l],
                         preferred_element_type=jnp.float32) + bh_ref[l]
            zt = jnp.dot(xb, wt_ref[l],
                         preferred_element_type=jnp.float32) + bt_ref[l]
            h = jnp.maximum(zh, 0.0)                     # relu    (VPU)
            t = 0.5 * (jnp.tanh(0.5 * zt) + 1.0)         # sigmoid (1 EUP op)
            x = x + t * (h - x)                          # highway combine
        o_ref[...] = x

    return kernel


def highway_forward(x, params, *, tm_max=512):
    """x: (..., num_units) float32 -> same shape (float32)."""
    D = x.shape[-1]
    lead = x.shape[:-1]
    n = 1
    for s in lead:
        n *= s
    x2 = x.reshape(n, D).astype(jnp.bfloat16)

    wh = params['wh'].astype(jnp.bfloat16)     # (L, D, D)
    wt = params['wt'].astype(jnp.bfloat16)     # (L, D, D)
    bh = params['bh']                          # (L, 1, D) f32
    bt = params['bt']                          # (L, 1, D) f32
    L = wh.shape[0]

    # Row tile: full slab when small, otherwise TM-row blocks (multiple of 8)
    # sharded across TensorCores via the parallel grid axis.
    tm = n if n <= tm_max else tm_max
    grid = (pl.cdiv(n, tm),)

    cost = pl.CostEstimate(
        flops=4 * n * D * D * L,                       # two (n,D)x(D,D) per layer
        transcendentals=n * D * L,                     # one tanh per elem/layer
        bytes_accessed=(x2.size * 2 + n * D * 4
                        + wh.size * 2 + wt.size * 2
                        + bh.size * 4 + bt.size * 4),
    )

    out = pl.pallas_call(
        _highway_kernel_factory(L),
        out_shape=jax.ShapeDtypeStruct((n, D), jnp.float32),
        grid_spec=pltpu.PrefetchScalarGridSpec(
            num_scalar_prefetch=0,
            grid=grid,
            in_specs=[
                pl.BlockSpec((tm, D), lambda i: (i, 0)),          # x rows
                pl.BlockSpec((L, D, D), lambda i: (0, 0, 0)),     # wh (resident)
                pl.BlockSpec((L, 1, D), lambda i: (0, 0, 0)),     # bh
                pl.BlockSpec((L, D, D), lambda i: (0, 0, 0)),     # wt
                pl.BlockSpec((L, 1, D), lambda i: (0, 0, 0)),     # bt
            ],
            out_specs=pl.BlockSpec((tm, D), lambda i: (i, 0)),
        ),
        compiler_params=pltpu.CompilerParams(
            dimension_semantics=("parallel",)),
        cost_estimate=cost,
    )(x2, wh, bh, wt, bt)
    return out.reshape(*lead, D)


# ----------------------------- parameters -----------------------------------
def init_params(key, num_units=NUM_UNITS, num_layers=NUM_LAYERS):
    """PyTorch nn.Linear default init: U(-1/sqrt(fan_in), 1/sqrt(fan_in))."""
    D = num_units
    bound = 1.0 / math.sqrt(D)
    keys = jax.random.split(key, 4 * num_layers)
    whs, bhs, wts, bts = [], [], [], []
    for l in range(num_layers):
        k1, k2, k3, k4 = keys[4 * l:4 * l + 4]
        w1 = jax.random.uniform(k1, (D, D), jnp.float32, -bound, bound)  # (out,in)
        b1 = jax.random.uniform(k2, (D,), jnp.float32, -bound, bound)
        w2 = jax.random.uniform(k3, (D, D), jnp.float32, -bound, bound)
        b2 = jax.random.uniform(k4, (D,), jnp.float32, -bound, bound)
        whs.append(w1.T)                       # y = x @ W.T + b  ->  x @ (W.T)
        bhs.append(b1.reshape(1, D))
        wts.append(w2.T)
        bts.append(b2.reshape(1, D))
    return dict(wh=jnp.stack(whs), bh=jnp.stack(bhs),
                wt=jnp.stack(wts), bt=jnp.stack(bts))


# ----------------------------- pure-JAX references ---------------------------
def highway_reference_f32(x, params):
    """Exact PyTorch-semantics reference, full f32."""
    out = x.astype(jnp.float32)
    for l in range(params['wh'].shape[0]):
        zh = jnp.dot(out, params['wh'][l],
                     precision=jax.lax.Precision.HIGHEST) + params['bh'][l]
        zt = jnp.dot(out, params['wt'][l],
                     precision=jax.lax.Precision.HIGHEST) + params['bt'][l]
        h = jax.nn.relu(zh)
        t = jax.nn.sigmoid(zt)
        out = h * t + out * (1.0 - t)
    return out


def highway_reference_bf16(x, params):
    """Same numerics as the kernel (bf16 matmul operands, f32 elementwise)."""
    out = x.astype(jnp.float32)
    for l in range(params['wh'].shape[0]):
        xb = out.astype(jnp.bfloat16)
        zh = jnp.dot(xb, params['wh'][l].astype(jnp.bfloat16),
                     preferred_element_type=jnp.float32) + params['bh'][l]
        zt = jnp.dot(xb, params['wt'][l].astype(jnp.bfloat16),
                     preferred_element_type=jnp.float32) + params['bt'][l]
        h = jnp.maximum(zh, 0.0)
        t = 0.5 * (jnp.tanh(0.5 * zt) + 1.0)
        out = out + t * (h - out)
    return out


# ----------------------------- main ------------------------------------------
if __name__ == "__main__":
    key = jax.random.PRNGKey(0)
    pkey, xkey = jax.random.split(key)
    params = init_params(pkey)
    x = jax.random.normal(xkey, (BATCH, SEQ, NUM_UNITS), jnp.float32)

    out = jax.jit(lambda xx: highway_forward(xx, params))(x)
    out = jax.block_until_ready(out)

    assert out.shape == (BATCH, SEQ, NUM_UNITS), out.shape
    assert bool(jnp.all(jnp.isfinite(out)))

    # Tight check against a JAX reference with the same (bf16 matmul) numerics.
    ref_bf16 = highway_reference_bf16(x, params)
    assert bool(jnp.allclose(out, ref_bf16, atol=2e-3, rtol=2e-3)), \
        float(jnp.max(jnp.abs(out - ref_bf16)))

    # Semantic check against the exact f32 PyTorch-equivalent reference.
    ref_f32 = highway_reference_f32(x, params)
    assert bool(jnp.allclose(out, ref_f32, atol=5e-2, rtol=5e-2)), \
        float(jnp.max(jnp.abs(out - ref_f32)))

    print("KERNEL_OK")
</pallas_src>

<mosaic_0001>
module attributes {stable_mosaic.version = 11 : i64} {
  func.func @kernel(%arg0: i32, %arg1: memref<32x32xbf16, #tpu.memory_space<vmem>>, %arg2: memref<4x32x32xbf16, #tpu.memory_space<vmem>>, %arg3: memref<4x1x32xf32, #tpu.memory_space<vmem>>, %arg4: memref<4x32x32xbf16, #tpu.memory_space<vmem>>, %arg5: memref<4x1x32xf32, #tpu.memory_space<vmem>>, %arg6: memref<32x32xf32, #tpu.memory_space<vmem>>) attributes {dimension_semantics = [#tpu.dimension_semantics<parallel>], iteration_bounds = array<i64: 1>, scalar_prefetch = 0 : i64, scratch_operands = 0 : i64, tpu.core_type = #tpu.core_type<tc>, window_params = [{transform_indices = @transform_0, window_bounds = array<i64: 32, 32>}, {pipeline_mode = #tpu.pipeline_mode<synchronous>, transform_indices = @transform_1, window_bounds = array<i64: 4, 32, 32>}, {pipeline_mode = #tpu.pipeline_mode<synchronous>, transform_indices = @transform_2, window_bounds = array<i64: 4, 1, 32>}, {pipeline_mode = #tpu.pipeline_mode<synchronous>, transform_indices = @transform_3, window_bounds = array<i64: 4, 32, 32>}, {pipeline_mode = #tpu.pipeline_mode<synchronous>, transform_indices = @transform_4, window_bounds = array<i64: 4, 1, 32>}, {transform_indices = @transform_5, window_bounds = array<i64: 32, 32>}]} {
    %c0 = arith.constant 0 : index
    %c0_0 = arith.constant 0 : index
    %0 = vector.load %arg1[%c0, %c0_0] : memref<32x32xbf16, #tpu.memory_space<vmem>>, vector<32x32xbf16>
    %1 = arith.extf %0 : vector<32x32xbf16> to vector<32x32xf32>
    %2 = arith.truncf %1 : vector<32x32xf32> to vector<32x32xbf16>
    %c0_1 = arith.constant 0 : index
    %c0_2 = arith.constant 0 : index
    %c0_3 = arith.constant 0 : index
    %3 = vector.load %arg2[%c0_1, %c0_2, %c0_3] : memref<4x32x32xbf16, #tpu.memory_space<vmem>>, vector<1x32x32xbf16>
    %4 = vector.shape_cast %3 : vector<1x32x32xbf16> to vector<32x32xbf16>
    %cst = arith.constant dense<0.000000e+00> : vector<32x32xf32>
    %5 = tpu.matmul %2, %4, %cst {dimension_numbers = #tpu.dot_dimension_numbers<[1], [0], [0], [1], [0, 0, 1, 1], [], []>} : vector<32x32xbf16>, vector<32x32xbf16>, vector<32x32xf32> -> vector<32x32xf32>
    %c0_4 = arith.constant 0 : index
    %c0_5 = arith.constant 0 : index
    %c0_6 = arith.constant 0 : index
    %6 = vector.load %arg3[%c0_4, %c0_5, %c0_6] : memref<4x1x32xf32, #tpu.memory_space<vmem>>, vector<1x1x32xf32>
    %7 = vector.shape_cast %6 : vector<1x1x32xf32> to vector<1x32xf32>
    %8 = vector.broadcast %7 : vector<1x32xf32> to vector<32x32xf32>
    %9 = arith.addf %5, %8 : vector<32x32xf32>
    %c0_7 = arith.constant 0 : index
    %c0_8 = arith.constant 0 : index
    %c0_9 = arith.constant 0 : index
    %10 = vector.load %arg4[%c0_7, %c0_8, %c0_9] : memref<4x32x32xbf16, #tpu.memory_space<vmem>>, vector<1x32x32xbf16>
    %11 = vector.shape_cast %10 : vector<1x32x32xbf16> to vector<32x32xbf16>
    %cst_10 = arith.constant dense<0.000000e+00> : vector<32x32xf32>
    %12 = tpu.matmul %2, %11, %cst_10 {dimension_numbers = #tpu.dot_dimension_numbers<[1], [0], [0], [1], [0, 0, 1, 1], [], []>} : vector<32x32xbf16>, vector<32x32xbf16>, vector<32x32xf32> -> vector<32x32xf32>
    %c0_11 = arith.constant 0 : index
    %c0_12 = arith.constant 0 : index
    %c0_13 = arith.constant 0 : index
    %13 = vector.load %arg5[%c0_11, %c0_12, %c0_13] : memref<4x1x32xf32, #tpu.memory_space<vmem>>, vector<1x1x32xf32>
    %14 = vector.shape_cast %13 : vector<1x1x32xf32> to vector<1x32xf32>
    %15 = vector.broadcast %14 : vector<1x32xf32> to vector<32x32xf32>
    %16 = arith.addf %12, %15 : vector<32x32xf32>
    %cst_14 = arith.constant 0.000000e+00 : f32
    %17 = vector.broadcast %cst_14 : f32 to vector<32x32xf32>
    %18 = arith.maximumf %9, %17 : vector<32x32xf32>
    %cst_15 = arith.constant 5.000000e-01 : f32
    %19 = vector.broadcast %cst_15 : f32 to vector<32x32xf32>
    %20 = arith.mulf %19, %16 : vector<32x32xf32>
    %21 = math.tanh %20 : vector<32x32xf32>
    %cst_16 = arith.constant 1.000000e+00 : f32
    %22 = vector.broadcast %cst_16 : f32 to vector<32x32xf32>
    %23 = arith.addf %21, %22 : vector<32x32xf32>
    %cst_17 = arith.constant 5.000000e-01 : f32
    %24 = vector.broadcast %cst_17 : f32 to vector<32x32xf32>
    %25 = arith.mulf %24, %23 : vector<32x32xf32>
    %26 = arith.subf %18, %1 : vector<32x32xf32>
    %27 = arith.mulf %25, %26 : vector<32x32xf32>
    %28 = arith.addf %1, %27 : vector<32x32xf32>
    %29 = arith.truncf %28 : vector<32x32xf32> to vector<32x32xbf16>
    %c1 = arith.constant 1 : index
    %c0_18 = arith.constant 0 : index
    %c0_19 = arith.constant 0 : index
    %30 = vector.load %arg2[%c1, %c0_18, %c0_19] : memref<4x32x32xbf16, #tpu.memory_space<vmem>>, vector<1x32x32xbf16>
    %31 = vector.shape_cast %30 : vector<1x32x32xbf16> to vector<32x32xbf16>
    %cst_20 = arith.constant dense<0.000000e+00> : vector<32x32xf32>
    %32 = tpu.matmul %29, %31, %cst_20 {dimension_numbers = #tpu.dot_dimension_numbers<[1], [0], [0], [1], [0, 0, 1, 1], [], []>} : vector<32x32xbf16>, vector<32x32xbf16>, vector<32x32xf32> -> vector<32x32xf32>
    %c1_21 = arith.constant 1 : index
    %c0_22 = arith.constant 0 : index
    %c0_23 = arith.constant 0 : index
    %33 = vector.load %arg3[%c1_21, %c0_22, %c0_23] : memref<4x1x32xf32, #tpu.memory_space<vmem>>, vector<1x1x32xf32>
    %34 = vector.shape_cast %33 : vector<1x1x32xf32> to vector<1x32xf32>
    %35 = vector.broadcast %34 : vector<1x32xf32> to vector<32x32xf32>
    %36 = arith.addf %32, %35 : vector<32x32xf32>
    %c1_24 = arith.constant 1 : index
    %c0_25 = arith.constant 0 : index
    %c0_26 = arith.constant 0 : index
    %37 = vector.load %arg4[%c1_24, %c0_25, %c0_26] : memref<4x32x32xbf16, #tpu.memory_space<vmem>>, vector<1x32x32xbf16>
    %38 = vector.shape_cast %37 : vector<1x32x32xbf16> to vector<32x32xbf16>
    %cst_27 = arith.constant dense<0.000000e+00> : vector<32x32xf32>
    %39 = tpu.matmul %29, %38, %cst_27 {dimension_numbers = #tpu.dot_dimension_numbers<[1], [0], [0], [1], [0, 0, 1, 1], [], []>} : vector<32x32xbf16>, vector<32x32xbf16>, vector<32x32xf32> -> vector<32x32xf32>
    %c1_28 = arith.constant 1 : index
    %c0_29 = arith.constant 0 : index
    %c0_30 = arith.constant 0 : index
    %40 = vector.load %arg5[%c1_28, %c0_29, %c0_30] : memref<4x1x32xf32, #tpu.memory_space<vmem>>, vector<1x1x32xf32>
    %41 = vector.shape_cast %40 : vector<1x1x32xf32> to vector<1x32xf32>
    %42 = vector.broadcast %41 : vector<1x32xf32> to vector<32x32xf32>
    %43 = arith.addf %39, %42 : vector<32x32xf32>
    %cst_31 = arith.constant 0.000000e+00 : f32
    %44 = vector.broadcast %cst_31 : f32 to vector<32x32xf32>
    %45 = arith.maximumf %36, %44 : vector<32x32xf32>
    %cst_32 = arith.constant 5.000000e-01 : f32
    %46 = vector.broadcast %cst_32 : f32 to vector<32x32xf32>
    %47 = arith.mulf %46, %43 : vector<32x32xf32>
    %48 = math.tanh %47 : vector<32x32xf32>
    %cst_33 = arith.constant 1.000000e+00 : f32
    %49 = vector.broadcast %cst_33 : f32 to vector<32x32xf32>
    %50 = arith.addf %48, %49 : vector<32x32xf32>
    %cst_34 = arith.constant 5.000000e-01 : f32
    %51 = vector.broadcast %cst_34 : f32 to vector<32x32xf32>
    %52 = arith.mulf %51, %50 : vector<32x32xf32>
    %53 = arith.subf %45, %28 : vector<32x32xf32>
    %54 = arith.mulf %52, %53 : vector<32x32xf32>
    %55 = arith.addf %28, %54 : vector<32x32xf32>
    %56 = arith.truncf %55 : vector<32x32xf32> to vector<32x32xbf16>
    %c2 = arith.constant 2 : index
    %c0_35 = arith.constant 0 : index
    %c0_36 = arith.constant 0 : index
    %57 = vector.load %arg2[%c2, %c0_35, %c0_36] : memref<4x32x32xbf16, #tpu.memory_space<vmem>>, vector<1x32x32xbf16>
    %58 = vector.shape_cast %57 : vector<1x32x32xbf16> to vector<32x32xbf16>
    %cst_37 = arith.constant dense<0.000000e+00> : vector<32x32xf32>
    %59 = tpu.matmul %56, %58, %cst_37 {dimension_numbers = #tpu.dot_dimension_numbers<[1], [0], [0], [1], [0, 0, 1, 1], [], []>} : vector<32x32xbf16>, vector<32x32xbf16>, vector<32x32xf32> -> vector<32x32xf32>
    %c2_38 = arith.constant 2 : index
    %c0_39 = arith.constant 0 : index
    %c0_40 = arith.constant 0 : index
    %60 = vector.load %arg3[%c2_38, %c0_39, %c0_40] : memref<4x1x32xf32, #tpu.memory_space<vmem>>, vector<1x1x32xf32>
    %61 = vector.shape_cast %60 : vector<1x1x32xf32> to vector<1x32xf32>
    %62 = vector.broadcast %61 : vector<1x32xf32> to vector<32x32xf32>
    %63 = arith.addf %59, %62 : vector<32x32xf32>
    %c2_41 = arith.constant 2 : index
    %c0_42 = arith.constant 0 : index
    %c0_43 = arith.constant 0 : index
    %64 = vector.load %arg4[%c2_41, %c0_42, %c0_43] : memref<4x32x32xbf16, #tpu.memory_space<vmem>>, vector<1x32x32xbf16>
    %65 = vector.shape_cast %64 : vector<1x32x32xbf16> to vector<32x32xbf16>
    %cst_44 = arith.constant dense<0.000000e+00> : vector<32x32xf32>
    %66 = tpu.matmul %56, %65, %cst_44 {dimension_numbers = #tpu.dot_dimension_numbers<[1], [0], [0], [1], [0, 0, 1, 1], [], []>} : vector<32x32xbf16>, vector<32x32xbf16>, vector<32x32xf32> -> vector<32x32xf32>
    %c2_45 = arith.constant 2 : index
    %c0_46 = arith.constant 0 : index
    %c0_47 = arith.constant 0 : index
    %67 = vector.load %arg5[%c2_45, %c0_46, %c0_47] : memref<4x1x32xf32, #tpu.memory_space<vmem>>, vector<1x1x32xf32>
    %68 = vector.shape_cast %67 : vector<1x1x32xf32> to vector<1x32xf32>
    %69 = vector.broadcast %68 : vector<1x32xf32> to vector<32x32xf32>
    %70 = arith.addf %66, %69 : vector<32x32xf32>
    %cst_48 = arith.constant 0.000000e+00 : f32
    %71 = vector.broadcast %cst_48 : f32 to vector<32x32xf32>
    %72 = arith.maximumf %63, %71 : vector<32x32xf32>
    %cst_49 = arith.constant 5.000000e-01 : f32
    %73 = vector.broadcast %cst_49 : f32 to vector<32x32xf32>
    %74 = arith.mulf %73, %70 : vector<32x32xf32>
    %75 = math.tanh %74 : vector<32x32xf32>
    %cst_50 = arith.constant 1.000000e+00 : f32
    %76 = vector.broadcast %cst_50 : f32 to vector<32x32xf32>
    %77 = arith.addf %75, %76 : vector<32x32xf32>
    %cst_51 = arith.constant 5.000000e-01 : f32
    %78 = vector.broadcast %cst_51 : f32 to vector<32x32xf32>
    %79 = arith.mulf %78, %77 : vector<32x32xf32>
    %80 = arith.subf %72, %55 : vector<32x32xf32>
    %81 = arith.mulf %79, %80 : vector<32x32xf32>
    %82 = arith.addf %55, %81 : vector<32x32xf32>
    %83 = arith.truncf %82 : vector<32x32xf32> to vector<32x32xbf16>
    %c3 = arith.constant 3 : index
    %c0_52 = arith.constant 0 : index
    %c0_53 = arith.constant 0 : index
    %84 = vector.load %arg2[%c3, %c0_52, %c0_53] : memref<4x32x32xbf16, #tpu.memory_space<vmem>>, vector<1x32x32xbf16>
    %85 = vector.shape_cast %84 : vector<1x32x32xbf16> to vector<32x32xbf16>
    %cst_54 = arith.constant dense<0.000000e+00> : vector<32x32xf32>
    %86 = tpu.matmul %83, %85, %cst_54 {dimension_numbers = #tpu.dot_dimension_numbers<[1], [0], [0], [1], [0, 0, 1, 1], [], []>} : vector<32x32xbf16>, vector<32x32xbf16>, vector<32x32xf32> -> vector<32x32xf32>
    %c3_55 = arith.constant 3 : index
    %c0_56 = arith.constant 0 : index
    %c0_57 = arith.constant 0 : index
    %87 = vector.load %arg3[%c3_55, %c0_56, %c0_57] : memref<4x1x32xf32, #tpu.memory_space<vmem>>, vector<1x1x32xf32>
    %88 = vector.shape_cast %87 : vector<1x1x32xf32> to vector<1x32xf32>
    %89 = vector.broadcast %88 : vector<1x32xf32> to vector<32x32xf32>
    %90 = arith.addf %86, %89 : vector<32x32xf32>
    %c3_58 = arith.constant 3 : index
    %c0_59 = arith.constant 0 : index
    %c0_60 = arith.constant 0 : index
    %91 = vector.load %arg4[%c3_58, %c0_59, %c0_60] : memref<4x32x32xbf16, #tpu.memory_space<vmem>>, vector<1x32x32xbf16>
    %92 = vector.shape_cast %91 : vector<1x32x32xbf16> to vector<32x32xbf16>
    %cst_61 = arith.constant dense<0.000000e+00> : vector<32x32xf32>
    %93 = tpu.matmul %83, %92, %cst_61 {dimension_numbers = #tpu.dot_dimension_numbers<[1], [0], [0], [1], [0, 0, 1, 1], [], []>} : vector<32x32xbf16>, vector<32x32xbf16>, vector<32x32xf32> -> vector<32x32xf32>
    %c3_62 = arith.constant 3 : index
    %c0_63 = arith.constant 0 : index
    %c0_64 = arith.constant 0 : index
    %94 = vector.load %arg5[%c3_62, %c0_63, %c0_64] : memref<4x1x32xf32, #tpu.memory_space<vmem>>, vector<1x1x32xf32>
    %95 = vector.shape_cast %94 : vector<1x1x32xf32> to vector<1x32xf32>
    %96 = vector.broadcast %95 : vector<1x32xf32> to vector<32x32xf32>
    %97 = arith.addf %93, %96 : vector<32x32xf32>
    %cst_65 = arith.constant 0.000000e+00 : f32
    %98 = vector.broadcast %cst_65 : f32 to vector<32x32xf32>
    %99 = arith.maximumf %90, %98 : vector<32x32xf32>
    %cst_66 = arith.constant 5.000000e-01 : f32
    %100 = vector.broadcast %cst_66 : f32 to vector<32x32xf32>
    %101 = arith.mulf %100, %97 : vector<32x32xf32>
    %102 = math.tanh %101 : vector<32x32xf32>
    %cst_67 = arith.constant 1.000000e+00 : f32
    %103 = vector.broadcast %cst_67 : f32 to vector<32x32xf32>
    %104 = arith.addf %102, %103 : vector<32x32xf32>
    %cst_68 = arith.constant 5.000000e-01 : f32
    %105 = vector.broadcast %cst_68 : f32 to vector<32x32xf32>
    %106 = arith.mulf %105, %104 : vector<32x32xf32>
    %107 = arith.subf %99, %82 : vector<32x32xf32>
    %108 = arith.mulf %106, %107 : vector<32x32xf32>
    %109 = arith.addf %82, %108 : vector<32x32xf32>
    %c0_69 = arith.constant 0 : index
    %c0_70 = arith.constant 0 : index
    %110 = vector.load %arg6[%c0_69, %c0_70] : memref<32x32xf32, #tpu.memory_space<vmem>>, vector<32x32xf32>
    tpu.vector_store %arg6[%c0_69, %c0_70], %109 {strides = array<i32>} : memref<32x32xf32, #tpu.memory_space<vmem>>, vector<32x32xf32>,
    return
  }
  func.func @transform_0(%arg0: i32) -> (i32, i32) {
    %c0_i32 = arith.constant 0 : i32
    %c0_i32_0 = arith.constant 0 : i32
    return %arg0, %c0_i32 : i32, i32
  }
  func.func @transform_1(%arg0: i32) -> (i32, i32, i32) {
    %c0_i32 = arith.constant 0 : i32
    %c0_i32_0 = arith.constant 0 : i32
    %c0_i32_1 = arith.constant 0 : i32
    %c0_i32_2 = arith.constant 0 : i32
    return %c0_i32, %c0_i32_0, %c0_i32_1 : i32, i32, i32
  }
  func.func @transform_2(%arg0: i32) -> (i32, i32, i32) {
    %c0_i32 = arith.constant 0 : i32
    %c0_i32_0 = arith.constant 0 : i32
    %c0_i32_1 = arith.constant 0 : i32
    %c0_i32_2 = arith.constant 0 : i32
    return %c0_i32, %c0_i32_0, %c0_i32_1 : i32, i32, i32
  }
  func.func @transform_3(%arg0: i32) -> (i32, i32, i32) {
    %c0_i32 = arith.constant 0 : i32
    %c0_i32_0 = arith.constant 0 : i32
    %c0_i32_1 = arith.constant 0 : i32
    %c0_i32_2 = arith.constant 0 : i32
    return %c0_i32, %c0_i32_0, %c0_i32_1 : i32, i32, i32
  }
  func.func @transform_4(%arg0: i32) -> (i32, i32, i32) {
    %c0_i32 = arith.constant 0 : i32
    %c0_i32_0 = arith.constant 0 : i32
    %c0_i32_1 = arith.constant 0 : i32
    %c0_i32_2 = arith.constant 0 : i32
    return %c0_i32, %c0_i32_0, %c0_i32_1 : i32, i32, i32
  }
  func.func @transform_5(%arg0: i32) -> (i32, i32) {
    %c0_i32 = arith.constant 0 : i32
    %c0_i32_0 = arith.constant 0 : i32
    return %arg0, %c0_i32 : i32, i32
  }
}

</mosaic_0001>

<bundles_post_ra>
// kernel: _lambda_.1
= control target key start
LH: loop header
LB: loop body
LE: loop exit
PB: predicated region body
PF: predicated region fallthrough
CT: control target
= control target key end

     0   :  { %10 = vsyncpa [#allocation3], 0  ;;  %s1280_s0 = inlined_call_operand.vmem [shape: bf16[32,32], index: 0, kind: input, shape index: {}]   ;;  %s1281_s1 = inlined_call_operand.vmem [shape: bf16[4,32,32], index: 1, kind: input, shape index: {}]   ;;  %s1282_s2 = inlined_call_operand.vmem [shape: f32[4,1,32], index: 2, kind: input, shape index: {}]   ;;  %s1283_s3 = inlined_call_operand.hbm [shape: bf16[4,32,32], index: 3, kind: input, shape index: {}]   ;;  %s1284_s4 = inlined_call_operand.vmem [shape: f32[4,1,32], index: 4, kind: input, shape index: {}]   ;;  %s1285_s5 = inlined_call_operand.hbm [shape: f32[32,32], index: 5, kind: output, shape index: {}]  }
   0x1   :  { %11 = vsyncpa [#allocation4], 0  ;;  %s1084_s18 = smov [#allocation2]   ;;  %s1036_s22 = scalar_lea.hbm %s1283_s3, 1024 }
   0x2   :  { %s23_s19 = sshll.u32 %s1084_s18, 4  ;;  %p1037_p0 = scmp.ne.s32.totalorder %s1283_s3, %s1036_s22  ;;  %s24_s19 = int_to_ptr.vmem [resolvable:$true] %s23_s19 }
   0x3   :  { %p1040_p1 = scmp.lt.u32.totalorder %s1036_s22, %s1283_s3 }
   0x5   :  { %p1042_p2 = pnand %p1040_p1, %p1037_p0 }
   0x7   :  { %1045 = shalt.err (!%p1042_p2)
}
   0x8   :  { %s1046_s27 = scalar_lea.vmem %s24_s19, 1024  ;;  %p1051_p4 = scmp.lt.s32.totalorder %s24_s19, %s24_s19 }
   0x9   :  { %p1047_p3 = scmp.ne.s32.totalorder %s24_s19, %s1046_s27  ;;  %p1052_p5 = scmp.lt.s32.totalorder %s1046_s27, %s1046_s27 }
   0xb   :  { %p1053_p6 = por %p1052_p5, %p1051_p4 }
   0xd   :  { %p1054_p7 = pnand %p1053_p6, %p1047_p3 }
   0xf   :  { %1057 = shalt.err (!%p1054_p7)
}
  0x10   :  { %s1085_s28 = smov 64   ;;  %s1086_s29 = smov 4  }
  0x11   :  { %29 = dma.hbm_to_vmem [thread:$0]  %s1283_s3, 1024, %s24_s19, [#allocation3], %s1085_s28, %s1085_s28, %s1086_s29  }
  0x12   :  { %1080 = dma.done.wait [#allocation3], 1024  }
  0x13   :  { %1081 = vsyncadd [#allocation3], 4294966272  ;;  %v984_v0 = vld [vmem:[#allocation2] sm:$0xff]   ;;  %v985_v1 = vld [vmem:[#allocation2 + $0x8] sm:$0xff]   ;;  %vm77_vm0 = vcmask 261120  }
  0x14   :  { %922 = vmatprep.subr.bf16.mxu1 %v984_v0  ;;  %v1135_v2 = vld [vmem:[%s1280_s0] sm:$0xff]   ;;  %v1140_v3 = vld [vmem:[%s1280_s0 + $0x8] sm:$0xff]   ;;  %v990_v6 = vld [vmem:[#allocation2 + $0x10] sm:$0xff]  }
  0x15   :  { %923 = vmatpush3.bf16.msra.mxu1 %v984_v0  ;;  %v988_v4 = vld [vmem:[%s1281_s1] sm:$0xff]   ;;  %v989_v5 = vld [vmem:[%s1281_s1 + $0x8] sm:$0xff]   ;;  %926 = vmatprep.mubr.msk.bf16.mxu1 %vm77_vm0, %v1135_v2  ;;  %v991_v7 = vld [vmem:[%s1281_s1 + $0x10] sm:$0xff]   ;;  %v40_v24 = vunpack.c.l.bf16 %v1135_v2  ;;  %v41_v30 = vunpack.c.h.bf16 %v1135_v2  ;;  %v42_v37 = vunpack.c.l.bf16 %v1140_v3  ;;  %v43_v44 = vunpack.c.h.bf16 %v1140_v3 }
  0x16   :  { %924 = vmatprep.subr.bf16.mxu1 %v985_v1  ;;  %914 = vmatprep.subr.bf16.mxu0 %v988_v4  ;;  %v992_v8 = vld [vmem:[#allocation2 + $0x18] sm:$0xff]   ;;  %v829_v10 = vld [vmem:[%s1284_s4] ss:$0 sm:$0xff] }
  0x17   :  { %915 = vmatpush3.bf16.msra.mxu0 %v988_v4  ;;  %918 = vmatprep.mubr.msk.bf16.mxu0 %vm77_vm0, %v1135_v2  ;;  %v993_v9 = vld [vmem:[%s1281_s1 + $0x18] sm:$0xff]   ;;  %v822_v16 = vld [vmem:[%s1282_s2] ss:$0 sm:$0xff]  ;;  %v996_v4 = vld [vmem:[#allocation2 + $0x28] sm:$0xff]  }
  0x18   :  { %916 = vmatprep.subr.bf16.mxu0 %v989_v5  ;;  %v994_v2 = vld [vmem:[#allocation2 + $0x20] sm:$0xff]  }
  0x19   :  { %925 = vmatpush3.bf16.msra.mxu1 %v985_v1 }
  0x1a   :  { %938 = vmatprep.subr.bf16.mxu1 %v990_v6 }
  0x1b   :  { %917 = vmatpush3.bf16.msra.mxu0 %v989_v5  ;;  %v997_v5 = vld [vmem:[%s1281_s1 + $0x28] sm:$0xff]  }
  0x1c   :  { %927 = vmatmul.mubr.msk.bf16.vlgmr.msra.gmra.mrb[0].mxu1 %vm77_vm0, %v1140_v3  ;;  %930 = vmatprep.subr.bf16.mxu0 %v991_v7 }
  0x1d   :  { %939 = vmatpush3.bf16.msra.mxu1 %v990_v6  ;;  %v845_v6 = vld [vmem:[%s1284_s4 + $0x1] ss:$0 sm:$0xff] }
  0x1e   :  { %919 = vmatmul.mubr.msk.bf16.vlgmr.msra.gmra.mrb[0].mxu0 %vm77_vm0, %v1140_v3  ;;  %940 = vmatprep.subr.bf16.mxu1 %v992_v8  ;;  %v995_v3 = vld [vmem:[%s1281_s1 + $0x20] sm:$0xff]  }
  0x1f   :  { %931 = vmatpush3.bf16.msra.mxu0 %v991_v7 }
  0x20   :  { %932 = vmatprep.subr.bf16.mxu0 %v993_v9 }
  0x21   :  { %941 = vmatpush3.bf16.msra.mxu1 %v992_v8 }
  0x22   :  { %954 = vmatprep.subr.bf16.mxu1 %v994_v2 }
  0x23   :  { %933 = vmatpush3.bf16.msra.mxu0 %v993_v9 }
  0x24   :  { %946 = vmatprep.subr.bf16.mxu0 %v995_v3 }
  0xef   :  { %v928_v11 = vpop.f32.mrb[0].mxu1 }
  0xf0   :  { %v199_v12 = vadd.f32 %v928_v11, %v829_v10  ;;  %v190_v13 = vpop.f32.mrb[1].mxu1 }
  0xf1   :  { %v191_v14 = vadd.f32 %v829_v10, %v190_v13  ;;  %v929_v15 = vpop.f32.mrb[2].mxu1  ;;  %v920_v20 = vpop.f32.mrb[0].mxu0 }
  0xf2   :  { %v211_v17 = vmul.f32 0.5, %v199_v12  ;;  %v202_v18 = vadd.f32 %v929_v15, %v829_v10  ;;  %v193_v19 = vpop.f32.mrb[3].mxu1  ;;  %v118_v23 = vpop.f32.mrb[1].mxu0  ;;  %v127_v33 = vadd.f32 %v920_v20, %v822_v16 }
  0xf3   :  { %v209_v21 = vmul.f32 0.5, %v191_v14  ;;  %v194_v22 = vadd.f32 %v829_v10, %v193_v19  ;;  %v119_v26 = vadd.f32 %v822_v16, %v118_v23  ;;  %v921_v27 = vpop.f32.mrb[2].mxu0  ;;  %v839_v23 = vld [vmem:[%s1282_s2 + $0x1] ss:$0 sm:$0xff] }
  0xf4   :  { %1004 = vtanh.f32 %v211_v17  ;;  %v212_v25 = vmul.f32 0.5, %v202_v18  ;;  %v121_v29 = vpop.f32.mrb[3].mxu0  ;;  %v207_v38 = vmax.f32 %v127_v33, 0.0  ;;  %v130_v39 = vadd.f32 %v921_v27, %v822_v16 }
  0xf5   :  { %1006 = vtanh.f32 %v209_v21  ;;  %v210_v28 = vmul.f32 0.5, %v194_v22  ;;  %v205_v31 = vmax.f32 %v119_v26, 0.0  ;;  %v122_v32 = vadd.f32 %v822_v16, %v121_v29 }
  0xf6   :  { %1008 = vtanh.f32 %v212_v25  ;;  %v227_v43 = vsub.f32 %v207_v38, %v42_v37  ;;  %v208_v45 = vmax.f32 %v130_v39, 0.0 }
  0xf7   :  { %1010 = vtanh.f32 %v210_v28  ;;  %v225_v34 = vsub.f32 %v205_v31, %v40_v24  ;;  %v206_v35 = vmax.f32 %v122_v32, 0.0 }
  0xf8   :  { %v228_v55 = vsub.f32 %v208_v45, %v43_v44 }
  0xf9   :  { %v226_v36 = vsub.f32 %v206_v35, %v41_v30 }
  0xfe   :  { %v1005_v40 = vpop.eup %1004 }
  0xff   :  { %v1007_v41 = vpop.eup %1006  ;;  %v219_v42 = vadd.f32 1.0, %v1005_v40 }
 0x100   :  { %v1009_v46 = vpop.eup %1008  ;;  %v217_v47 = vadd.f32 1.0, %v1007_v41 }
 0x101   :  { %v1011_v48 = vpop.eup %1010  ;;  %v223_v49 = vmul.f32 0.5, %v219_v42  ;;  %v220_v50 = vadd.f32 1.0, %v1009_v46 }
 0x102   :  { %v221_v51 = vmul.f32 0.5, %v217_v47  ;;  %v218_v52 = vadd.f32 1.0, %v1011_v48 }
 0x103   :  { %v224_v53 = vmul.f32 0.5, %v220_v50  ;;  %v231_v54 = vmul.f32 %v227_v43, %v223_v49 }
 0x104   :  { %v222_v56 = vmul.f32 0.5, %v218_v52  ;;  %v229_v57 = vmul.f32 %v225_v34, %v221_v51 }
 0x105   :  { %v232_v58 = vmul.f32 %v228_v55, %v224_v53  ;;  %v1178_v63 = vadd.f32 %v231_v54, %v42_v37 }
 0x106   :  { %v1172_v59 = vadd.f32 %v229_v57, %v40_v24  ;;  %v230_v60 = vmul.f32 %v226_v36, %v222_v56 }
 0x107   :  { %v1174_v61 = vadd.f32 %v232_v58, %v43_v44  ;;  %v998_v58 = vld [vmem:[#allocation2 + $0x30] sm:$0xff]  }
 0x108   :  { %v1176_v62 = vadd.f32 %v230_v60, %v41_v30  ;;  %v1000_v60 = vld [vmem:[#allocation2 + $0x38] sm:$0xff]  }
 0x109   :  { %v238_v1 = vpack.c.bf16 %v1174_v61, %v1178_v63 }
 0x10a   :  { %v237_v0 = vpack.c.bf16 %v1176_v62, %v1172_v59 }
 0x10c   :  { %934 = vmatprep.mubr.msk.bf16.mxu0 %vm77_vm0, %v237_v0  ;;  %942 = vmatprep.mubr.msk.bf16.mxu1 %vm77_vm0, %v237_v0 }
 0x10d   :  { %935 = vmatmul.mubr.msk.bf16.vlgmr.msra.gmra.mrb[4].mxu0 %vm77_vm0, %v238_v1  ;;  %943 = vmatmul.mubr.msk.bf16.vlgmr.msra.gmra.mrb[4].mxu1 %vm77_vm0, %v238_v1 }
 0x10e   :  { %955 = vmatpush3.bf16.msra.mxu1 %v994_v2  ;;  %947 = vmatpush3.bf16.msra.mxu0 %v995_v3 }
 0x10f   :  { %956 = vmatprep.subr.bf16.mxu1 %v996_v4  ;;  %948 = vmatprep.subr.bf16.mxu0 %v997_v5 }
 0x112   :  { %957 = vmatpush3.bf16.msra.mxu1 %v996_v4  ;;  %949 = vmatpush3.bf16.msra.mxu0 %v997_v5 }
 0x113   :  { %970 = vmatprep.subr.bf16.mxu1 %v998_v58 }
 0x1e0   :  { %v936_v7 = vpop.f32.mrb[4].mxu0  ;;  %v944_v8 = vpop.f32.mrb[4].mxu1 }
 0x1e1   :  { %v387_v9 = vadd.f32 %v944_v8, %v845_v6  ;;  %v304_v10 = vpop.f32.mrb[5].mxu0  ;;  %v378_v11 = vpop.f32.mrb[5].mxu1  ;;  %v313_v24 = vadd.f32 %v936_v7, %v839_v23 }
 0x1e2   :  { %v379_v12 = vadd.f32 %v845_v6, %v378_v11  ;;  %v937_v13 = vpop.f32.mrb[6].mxu0  ;;  %v945_v14 = vpop.f32.mrb[6].mxu1  ;;  %v305_v25 = vadd.f32 %v839_v23, %v304_v10 }
 0x1e3   :  { %v399_v15 = vmul.f32 0.5, %v387_v9  ;;  %v390_v16 = vadd.f32 %v945_v14, %v845_v6  ;;  %v307_v17 = vpop.f32.mrb[7].mxu0  ;;  %v381_v18 = vpop.f32.mrb[7].mxu1  ;;  %v316_v26 = vadd.f32 %v937_v13, %v839_v23  ;;  %v395_v28 = vmax.f32 %v313_v24, 0.0 }
 0x1e4   :  { %v397_v19 = vmul.f32 0.5, %v379_v12  ;;  %v382_v20 = vadd.f32 %v845_v6, %v381_v18  ;;  %v308_v27 = vadd.f32 %v839_v23, %v307_v17  ;;  %v393_v30 = vmax.f32 %v305_v25, 0.0 }
 0x1e5   :  { %1012 = vtanh.f32 %v399_v15  ;;  %v400_v21 = vmul.f32 0.5, %v390_v16  ;;  %v396_v33 = vmax.f32 %v316_v26, 0.0  ;;  %v415_v38 = vsub.f32 %v395_v28, %v1178_v63  ;;  %v855_v15 = vld [vmem:[%s1282_s2 + $0x2] ss:$0 sm:$0xff] }
 0x1e6   :  { %1014 = vtanh.f32 %v397_v19  ;;  %v398_v22 = vmul.f32 0.5, %v382_v20  ;;  %v394_v36 = vmax.f32 %v308_v27, 0.0  ;;  %v413_v41 = vsub.f32 %v393_v30, %v1172_v59 }
 0x1e7   :  { %1016 = vtanh.f32 %v400_v21  ;;  %v416_v45 = vsub.f32 %v396_v33, %v1174_v61 }
 0x1e8   :  { %1018 = vtanh.f32 %v398_v22  ;;  %v414_v48 = vsub.f32 %v394_v36, %v1176_v62 }
 0x1ef   :  { %v1013_v29 = vpop.eup %1012 }
 0x1f0   :  { %v1015_v31 = vpop.eup %1014  ;;  %v407_v32 = vadd.f32 1.0, %v1013_v29 }
 0x1f1   :  { %v1017_v34 = vpop.eup %1016  ;;  %v405_v35 = vadd.f32 1.0, %v1015_v31 }
 0x1f2   :  { %v1019_v37 = vpop.eup %1018  ;;  %v411_v39 = vmul.f32 0.5, %v407_v32  ;;  %v408_v40 = vadd.f32 1.0, %v1017_v34 }
 0x1f3   :  { %v409_v42 = vmul.f32 0.5, %v405_v35  ;;  %v406_v43 = vadd.f32 1.0, %v1019_v37 }
 0x1f4   :  { %v419_v44 = vmul.f32 %v415_v38, %v411_v39  ;;  %v412_v46 = vmul.f32 0.5, %v408_v40 }
 0x1f5   :  { %v417_v47 = vmul.f32 %v413_v41, %v409_v42  ;;  %v410_v49 = vmul.f32 0.5, %v406_v43 }
 0x1f6   :  { %v420_v50 = vmul.f32 %v416_v45, %v412_v46  ;;  %v1214_v55 = vadd.f32 %v419_v44, %v1178_v63 }
 0x1f7   :  { %v418_v51 = vmul.f32 %v414_v48, %v410_v49  ;;  %v1208_v53 = vadd.f32 %v417_v47, %v1172_v59  ;;  %v999_v59 = vld [vmem:[%s1281_s1 + $0x30] sm:$0xff]  }
 0x1f8   :  { %v1205_v52 = vadd.f32 %v420_v50, %v1174_v61  ;;  %962 = vmatprep.subr.bf16.mxu0 %v999_v59  ;;  %v1001_v61 = vld [vmem:[%s1281_s1 + $0x38] sm:$0xff]   ;;  %v877_v50 = vld [vmem:[%s1284_s4 + $0x3] ss:$0 sm:$0xff] }
 0x1f9   :  { %v1211_v54 = vadd.f32 %v418_v51, %v1176_v62  ;;  %v861_v62 = vld [vmem:[%s1284_s4 + $0x2] ss:$0 sm:$0xff] }
 0x1fa   :  { %v426_v57 = vpack.c.bf16 %v1205_v52, %v1214_v55 }
 0x1fb   :  { %v425_v56 = vpack.c.bf16 %v1211_v54, %v1208_v53 }
 0x1fd   :  { %950 = vmatprep.mubr.msk.bf16.mxu0 %vm77_vm0, %v425_v56  ;;  %958 = vmatprep.mubr.msk.bf16.mxu1 %vm77_vm0, %v425_v56 }
 0x1fe   :  { %951 = vmatmul.mubr.msk.bf16.vlgmr.msra.gmra.mrb[8].mxu0 %vm77_vm0, %v426_v57  ;;  %959 = vmatmul.mubr.msk.bf16.vlgmr.msra.gmra.mrb[8].mxu1 %vm77_vm0, %v426_v57 }
 0x1ff   :  { %971 = vmatpush3.bf16.msra.mxu1 %v998_v58  ;;  %963 = vmatpush3.bf16.msra.mxu0 %v999_v59 }
 0x200   :  { %972 = vmatprep.subr.bf16.mxu1 %v1000_v60  ;;  %964 = vmatprep.subr.bf16.mxu0 %v1001_v61 }
 0x203   :  { %973 = vmatpush3.bf16.msra.mxu1 %v1000_v60  ;;  %965 = vmatpush3.bf16.msra.mxu0 %v1001_v61 }
 0x2d1   :  { %v952_v63 = vpop.f32.mrb[8].mxu0  ;;  %v960_v0 = vpop.f32.mrb[8].mxu1 }
 0x2d2   :  { %v575_v1 = vadd.f32 %v960_v0, %v861_v62  ;;  %v492_v2 = vpop.f32.mrb[9].mxu0  ;;  %v566_v3 = vpop.f32.mrb[9].mxu1  ;;  %v501_v16 = vadd.f32 %v952_v63, %v855_v15 }
 0x2d3   :  { %v567_v4 = vadd.f32 %v861_v62, %v566_v3  ;;  %v953_v5 = vpop.f32.mrb[10].mxu0  ;;  %v961_v6 = vpop.f32.mrb[10].mxu1  ;;  %v493_v17 = vadd.f32 %v855_v15, %v492_v2  ;;  %v871_v3 = vld [vmem:[%s1282_s2 + $0x3] ss:$0 sm:$0xff]  ;;  %s1087_s2 = smov [#allocation5]  }
 0x2d4   :  { %v587_v7 = vmul.f32 0.5, %v575_v1  ;;  %v578_v8 = vadd.f32 %v961_v6, %v861_v62  ;;  %v495_v9 = vpop.f32.mrb[11].mxu0  ;;  %v569_v10 = vpop.f32.mrb[11].mxu1  ;;  %v504_v18 = vadd.f32 %v953_v5, %v855_v15  ;;  %v583_v20 = vmax.f32 %v501_v16, 0.0  ;;  %s810_s13 = sshll.u32 %s1087_s2, 4  ;;  %s811_s13 = int_to_ptr.vmem [resolvable:$true] %s810_s13 }
 0x2d5   :  { %v585_v11 = vmul.f32 0.5, %v567_v4  ;;  %v570_v12 = vadd.f32 %v861_v62, %v569_v10  ;;  %v496_v19 = vadd.f32 %v855_v15, %v495_v9  ;;  %v581_v22 = vmax.f32 %v493_v17, 0.0  ;;  %s1058_s0 = scalar_lea.vmem %s811_s13, 512  ;;  %p1063_p9 = scmp.lt.s32.totalorder %s811_s13, %s811_s13 }
 0x2d6   :  { %1020 = vtanh.f32 %v587_v7  ;;  %v588_v13 = vmul.f32 0.5, %v578_v8  ;;  %v584_v25 = vmax.f32 %v504_v18, 0.0  ;;  %v603_v30 = vsub.f32 %v583_v20, %v1214_v55  ;;  %p1059_p8 = scmp.ne.s32.totalorder %s811_s13, %s1058_s0  ;;  %p1064_p10 = scmp.lt.s32.totalorder %s1058_s0, %s1058_s0 }
 0x2d7   :  { %1022 = vtanh.f32 %v585_v11  ;;  %v586_v14 = vmul.f32 0.5, %v570_v12  ;;  %v582_v28 = vmax.f32 %v496_v19, 0.0  ;;  %v601_v33 = vsub.f32 %v581_v22, %v1208_v53 }
 0x2d8   :  { %1024 = vtanh.f32 %v588_v13  ;;  %v604_v37 = vsub.f32 %v584_v25, %v1205_v52  ;;  %p1065_p11 = por %p1064_p10, %p1063_p9 }
 0x2d9   :  { %1026 = vtanh.f32 %v586_v14  ;;  %v602_v40 = vsub.f32 %v582_v28, %v1211_v54 }
 0x2da   :  { %p1066_p12 = pnand %p1065_p11, %p1059_p8 }
 0x2e0   :  { %v1021_v21 = vpop.eup %1020 }
 0x2e1   :  { %v1023_v23 = vpop.eup %1022  ;;  %v595_v24 = vadd.f32 1.0, %v1021_v21 }
 0x2e2   :  { %v1025_v26 = vpop.eup %1024  ;;  %v593_v27 = vadd.f32 1.0, %v1023_v23 }
 0x2e3   :  { %v1027_v29 = vpop.eup %1026  ;;  %v599_v31 = vmul.f32 0.5, %v595_v24  ;;  %v596_v32 = vadd.f32 1.0, %v1025_v26 }
 0x2e4   :  { %v597_v34 = vmul.f32 0.5, %v593_v27  ;;  %v594_v35 = vadd.f32 1.0, %v1027_v29 }
 0x2e5   :  { %v607_v36 = vmul.f32 %v603_v30, %v599_v31  ;;  %v600_v38 = vmul.f32 0.5, %v596_v32 }
 0x2e6   :  { %v605_v39 = vmul.f32 %v601_v33, %v597_v34  ;;  %v598_v41 = vmul.f32 0.5, %v594_v35 }
 0x2e7   :  { %v608_v42 = vmul.f32 %v604_v37, %v600_v38  ;;  %v611_v47 = vadd.f32 %v607_v36, %v1214_v55 }
 0x2e8   :  { %v606_v43 = vmul.f32 %v602_v40, %v598_v41  ;;  %v609_v45 = vadd.f32 %v605_v39, %v1208_v53 }
 0x2e9   :  { %v1241_v44 = vadd.f32 %v608_v42, %v1205_v52 }
 0x2ea   :  { %v1245_v46 = vadd.f32 %v606_v43, %v1211_v54 }
 0x2eb   :  { %v614_v49 = vpack.c.bf16 %v1241_v44, %v611_v47 }
 0x2ec   :  { %v613_v48 = vpack.c.bf16 %v1245_v46, %v609_v45 }
 0x2ee   :  { %966 = vmatprep.mubr.msk.bf16.mxu0 %vm77_vm0, %v613_v48  ;;  %974 = vmatprep.mubr.msk.bf16.mxu1 %vm77_vm0, %v613_v48 }
 0x2ef   :  { %967 = vmatmul.mubr.msk.bf16.vlgmr.msra.gmra.mrb[12].mxu0 %vm77_vm0, %v614_v49  ;;  %975 = vmatmul.mubr.msk.bf16.vlgmr.msra.gmra.mrb[12].mxu1 %vm77_vm0, %v614_v49 }
 0x3c2   :  { %v968_v51 = vpop.f32.mrb[12].mxu0  ;;  %v976_v52 = vpop.f32.mrb[12].mxu1 }
 0x3c3   :  { %v763_v53 = vadd.f32 %v976_v52, %v877_v50  ;;  %v680_v54 = vpop.f32.mrb[13].mxu0  ;;  %v754_v55 = vpop.f32.mrb[13].mxu1  ;;  %v689_v4 = vadd.f32 %v968_v51, %v871_v3 }
 0x3c4   :  { %v755_v56 = vadd.f32 %v877_v50, %v754_v55  ;;  %v969_v57 = vpop.f32.mrb[14].mxu0  ;;  %v977_v58 = vpop.f32.mrb[14].mxu1  ;;  %v681_v5 = vadd.f32 %v871_v3, %v680_v54 }
 0x3c5   :  { %v775_v59 = vmul.f32 0.5, %v763_v53  ;;  %v766_v60 = vadd.f32 %v977_v58, %v877_v50  ;;  %v683_v61 = vpop.f32.mrb[15].mxu0  ;;  %v757_v62 = vpop.f32.mrb[15].mxu1  ;;  %v692_v6 = vadd.f32 %v969_v57, %v871_v3  ;;  %v771_v8 = vmax.f32 %v689_v4, 0.0 }
 0x3c6   :  { %v773_v63 = vmul.f32 0.5, %v755_v56  ;;  %v758_v0 = vadd.f32 %v877_v50, %v757_v62  ;;  %v684_v7 = vadd.f32 %v871_v3, %v683_v61  ;;  %v769_v10 = vmax.f32 %v681_v5, 0.0 }
 0x3c7   :  { %1028 = vtanh.f32 %v775_v59  ;;  %v776_v1 = vmul.f32 0.5, %v766_v60  ;;  %v772_v13 = vmax.f32 %v692_v6, 0.0  ;;  %v791_v18 = vsub.f32 %v771_v8, %v611_v47 }
 0x3c8   :  { %1030 = vtanh.f32 %v773_v63  ;;  %v774_v2 = vmul.f32 0.5, %v758_v0  ;;  %v770_v16 = vmax.f32 %v684_v7, 0.0  ;;  %v789_v21 = vsub.f32 %v769_v10, %v609_v45 }
 0x3c9   :  { %1032 = vtanh.f32 %v776_v1  ;;  %v792_v25 = vsub.f32 %v772_v13, %v1241_v44 }
 0x3ca   :  { %1034 = vtanh.f32 %v774_v2  ;;  %v790_v28 = vsub.f32 %v770_v16, %v1245_v46 }
 0x3d1   :  { %v1029_v9 = vpop.eup %1028 }
 0x3d2   :  { %v1031_v11 = vpop.eup %1030  ;;  %v783_v12 = vadd.f32 1.0, %v1029_v9 }
 0x3d3   :  { %v1033_v14 = vpop.eup %1032  ;;  %v781_v15 = vadd.f32 1.0, %v1031_v11 }
 0x3d4   :  { %v1035_v17 = vpop.eup %1034  ;;  %v787_v19 = vmul.f32 0.5, %v783_v12  ;;  %v784_v20 = vadd.f32 1.0, %v1033_v14 }
 0x3d5   :  { %v785_v22 = vmul.f32 0.5, %v781_v15  ;;  %v782_v23 = vadd.f32 1.0, %v1035_v17 }
 0x3d6   :  { %v795_v24 = vmul.f32 %v791_v18, %v787_v19  ;;  %v788_v26 = vmul.f32 0.5, %v784_v20 }
 0x3d7   :  { %v793_v27 = vmul.f32 %v789_v21, %v785_v22  ;;  %v786_v29 = vmul.f32 0.5, %v782_v23 }
 0x3d8   :  { %v799_v30 = vadd.f32 %v795_v24, %v611_v47  ;;  %v796_v31 = vmul.f32 %v792_v25, %v788_v26 }
 0x3d9   :  { %v797_v32 = vadd.f32 %v793_v27, %v609_v45  ;;  %v794_v33 = vmul.f32 %v790_v28, %v786_v29 }
 0x3da   :  { %803 = vst.msk [vmem:[#allocation5 + $0x10] sm:$0xff] %vm77_vm0, %v799_v30  ;;  %v800_v34 = vadd.f32 %v796_v31, %v1241_v44 }
 0x3db   :  { %801 = vst.msk [vmem:[#allocation5] sm:$0xff] %vm77_vm0, %v797_v32  ;;  %v798_v35 = vadd.f32 %v794_v33, %v1245_v46 }
 0x3dc   :  { %804 = vst.msk [vmem:[#allocation5 + $0x18] sm:$0xff] %vm77_vm0, %v800_v34 }
 0x3dd   :  { %802 = vst.msk [vmem:[#allocation5 + $0x8] sm:$0xff] %vm77_vm0, %v798_v35 }
 0x3de   :  { %1069 = shalt.err (!%p1066_p12)
}
 0x3df   :  { %s1070_s16 = scalar_lea.hbm %s1285_s5, 512 }
 0x3e0   :  { %p1071_p13 = scmp.ne.s32.totalorder %s1285_s5, %s1070_s16  ;;  %p1074_p0 = scmp.lt.u32.totalorder %s1070_s16, %s1285_s5 }
 0x3e2   :  { %p1076_p1 = pnand %p1074_p0, %p1071_p13 }
 0x3e4   :  { %1079 = shalt.err (!%p1076_p1)
}
 0x3e5   :  { %s1088_s21 = smov 128   ;;  %s1089_s22 = smov 8  }
 0x3e6   :  { %816 = dma.vmem_to_hbm [thread:$0]  %s811_s13, 512, %s1285_s5, [#allocation4], %s1088_s21, %s1088_s21, %s1089_s22  }
 0x3e7   :  { %1082 = dma.done.wait [#allocation4], 512  }
 0x3e8   :  { %1083 = vsyncadd [#allocation4], 4294966784 }
 0x3e9   :  { %820 = vsyncpa [#allocation3], 1 }
 0x3ea   :  { %821 = vsyncpa [#allocation4], 1 }

</bundles_post_ra>
